<compile_context>
chip_gen: v7x
topology: tpu7x:2x2x1
jax: 0.10.0
libtpu: 0.0.40
codegen_flags: <defaults>
</compile_context>

<pallas_src>
import functools
from typing import NamedTuple

import jax
import jax.numpy as jnp
from jax import lax
from jax.experimental import pallas as pl
from jax.experimental.pallas import tpu as pltpu

_MIB = 1024 * 1024


def _round_up(x, m):
    return ((x + m - 1) // m) * m


def _cdiv(a, b):
    return (a + b - 1) // b


def _vmem_capacity_bytes():
    """Physical per-TensorCore VMEM (128 MiB on v5e/v6e, 64 MiB on v7x)."""
    try:
        info = pltpu.get_tpu_info()
        cap = getattr(info, "vmem_capacity_bytes", None)
        if cap:
            return int(cap)
    except Exception:
        pass
    return 128 * _MIB


def _vmem_budget_bytes(cap):
    # Leave headroom for Mosaic internal scratch / semaphores:
    #   128 MiB (v5e/v6e) -> ~108 MiB,  64 MiB (v7x) -> ~52 MiB.
    return min(int(cap * 0.85), cap - 12 * _MIB)


def _gelu_exact(x):
    # torch.nn.functional.gelu default (approximate='none'): 0.5*x*(1+erf(x/sqrt(2)))
    return 0.5 * x * (1.0 + lax.erf(x * 0.7071067811865476))


# ---------------------------------------------------------------------------
# Kernel
# ---------------------------------------------------------------------------
def _mlp_kernel(x_ref, whg_ref, bhg_ref, wo_ref, bo_ref, o_ref, acc_ref):
    # x_ref   : (tm, H)       token tile, resident across the k (intermediate) axis
    # whg_ref : (H, 2*ti)     fused [Wh | Wg] columns for intermediate tile k
    # bhg_ref : (1, 2*ti)     fused [bh | bg] for intermediate tile k
    # wo_ref  : (ti, H)       Wo rows for intermediate tile k
    # bo_ref  : (1, H)        output bias (constant block)
    # o_ref   : (tm, H)       output tile (same block across k -> accumulator pattern)
    # acc_ref : (tm, H) f32   scratch accumulator
    k = pl.program_id(1)

    @pl.when(k == 0)
    def _():
        # Seed the accumulator with the output bias: saves a (tm, H) add in the epilogue.
        acc_ref[...] = jnp.broadcast_to(bo_ref[...], acc_ref.shape)

    ti = whg_ref.shape[1] // 2
    x = x_ref[...]

    # One fused MXU stream of width 2*ti covers both the hidden and gate projections.
    hg = jnp.dot(x, whg_ref[...], preferred_element_type=jnp.float32) + bhg_ref[...]
    h = _gelu_exact(hg[:, :ti])          # exact erf-gelu, f32 elementwise
    g = hg[:, ti:]
    inter = (h * g).astype(wo_ref.dtype)

    acc_ref[...] += jnp.dot(inter, wo_ref[...], preferred_element_type=jnp.float32)

    @pl.when(k == pl.num_programs(1) - 1)
    def _():
        o_ref[...] = acc_ref[...].astype(o_ref.dtype)


# ---------------------------------------------------------------------------
# Parameter packing (do once at load time, NOT per forward call)
# ---------------------------------------------------------------------------
class PackedMLP(NamedTuple):
    whg: jax.Array   # (H, 2*I_pad)  per k-tile fused [Wh_k | Wg_k] columns (mxu dtype)
    bhg: jax.Array   # (1, 2*I_pad)  fused [bh_k | bg_k] (f32)
    wo: jax.Array    # (I_pad, H)    Wo rows (mxu dtype)
    bo: jax.Array    # (1, H)        output bias (f32)


def choose_intermediate_tile(hidden_size, intermediate_size,
                             mxu_dtype=jnp.bfloat16, vmem_budget=None):
    """Pick ti so double-buffered weight blocks use <= ~1/3 of the VMEM budget."""
    if vmem_budget is None:
        vmem_budget = _vmem_budget_bytes(_vmem_capacity_bytes())
    isz = jnp.dtype(mxu_dtype).itemsize
    ti_cap = int(0.9 * vmem_budget) // (3 * 6 * hidden_size * isz)
    ti_cap = max(128, (ti_cap // 128) * 128)
    return min(ti_cap, _round_up(intermediate_size, 128), 2048)


def pack_mlp_params(w_h, b_h, w_g, b_g, w_o, b_o, *, mxu_dtype=jnp.bfloat16, ti=None):
    """Repack PyTorch-layout weights once at parameter-load time.

    w_h, w_g: (I, H); w_o: (H, I); biases 1-D.  Returns (PackedMLP, ti).
    Doing this here avoids re-reading and re-writing the full weight set in HBM on
    every forward call (which would cost ~2-3x the kernel's own weight traffic).
    """
    I, H = w_h.shape
    if ti is None:
        ti = choose_intermediate_tile(H, I, mxu_dtype)
    I_pad = _round_up(I, ti)
    gk = I_pad // ti

    wh_t, wg_t, wo_t = w_h.T, w_g.T, w_o.T          # (H,I), (H,I), (I,H)
    bh1, bg1 = b_h, b_g
    if I_pad != I:
        p = I_pad - I
        wh_t = jnp.pad(wh_t, ((0, 0), (0, p)))
        wg_t = jnp.pad(wg_t, ((0, 0), (0, p)))
        wo_t = jnp.pad(wo_t, ((0, p), (0, 0)))
        bh1 = jnp.pad(bh1, (0, p))
        bg1 = jnp.pad(bg1, (0, p))

    # For intermediate tile k, columns [2k*ti, 2k*ti + 2*ti) of whg hold [Wh_k | Wg_k],
    # so one (H, 2*ti) BlockSpec block feeds a single fused matmul.
    whg = jnp.concatenate(
        [wh_t.reshape(H, gk, ti), wg_t.reshape(H, gk, ti)], axis=-1
    ).reshape(H, 2 * I_pad).astype(mxu_dtype)
    bhg = jnp.concatenate(
        [bh1.reshape(gk, ti), bg1.reshape(gk, ti)], axis=-1
    ).reshape(1, 2 * I_pad).astype(jnp.float32)
    wo_t = wo_t.astype(mxu_dtype)
    bo2 = b_o.reshape(1, H).astype(jnp.float32)

    return PackedMLP(whg=whg, bhg=bhg, wo=wo_t, bo=bo2), ti


# ---------------------------------------------------------------------------
# Forward (jitted; weights are already packed)
# ---------------------------------------------------------------------------
@functools.partial(jax.jit, static_argnames=("ti",))
def mlp_forward_packed(hidden_states, packed, *, ti):
    """hidden_states: (B, S, H); packed: PackedMLP from pack_mlp_params."""
    orig_dtype = hidden_states.dtype
    B, S, H = hidden_states.shape
    M = B * S

    mxu_dtype = packed.whg.dtype
    I_pad = packed.whg.shape[1] // 2
    gk = I_pad // ti

    isz = jnp.dtype(mxu_dtype).itemsize
    out_isz = jnp.dtype(orig_dtype).itemsize

    vmem_cap = _vmem_capacity_bytes()
    budget = _vmem_budget_bytes(vmem_cap)
    tile_budget = int(0.9 * budget)

    # --- choose tm from the remaining VMEM budget (tm sets the compute/HBM roofline) --
    weight_block_bytes = 2 * (2 * H * ti + ti * H) * isz           # double-buffered whg + wo
    per_row = H * (2 * isz + 2 * out_isz + 4) + 20 * ti            # x/out (dbl-buf) + f32 acc + hg/h/g temps
    tm_cap = max(8, (tile_budget - weight_block_bytes) // per_row)
    tm_cap = min(max(8, (tm_cap // 8) * 8), 1024)

    gm = max(1, _cdiv(M, tm_cap))
    if M >= 256:
        gm = max(gm, 2)            # keep both v7x TensorCores busy on the parallel axis
    tm = _round_up(_cdiv(M, gm), 8)
    M_pad = gm * tm

    x2d = hidden_states.reshape(M, H)
    if M_pad != M:
        x2d = jnp.pad(x2d, ((0, M_pad - M), (0, 0)))
    x2d = x2d.astype(mxu_dtype)

    cost = pl.CostEstimate(
        flops=6 * M_pad * H * I_pad,
        transcendentals=0,                                  # erf lowers to a VPU polynomial
        bytes_accessed=(M_pad * H * isz                     # x
                        + gm * 3 * H * I_pad * isz          # [Wh|Wg] + Wo, re-streamed per M tile
                        + M_pad * H * out_isz),             # out
    )

    out2d = pl.pallas_call(
        _mlp_kernel,
        out_shape=jax.ShapeDtypeStruct((M_pad, H), orig_dtype),
        grid_spec=pltpu.PrefetchScalarGridSpec(
            num_scalar_prefetch=0,
            grid=(gm, gk),                                  # reduction axis last
            in_specs=[
                pl.BlockSpec((tm, H), lambda i, k: (i, 0)),       # x tile (resident over k)
                pl.BlockSpec((H, 2 * ti), lambda i, k: (0, k)),   # fused [Wh|Wg] tile
                pl.BlockSpec((1, 2 * ti), lambda i, k: (0, k)),   # fused [bh|bg] tile
                pl.BlockSpec((ti, H), lambda i, k: (k, 0)),       # Wo tile
                pl.BlockSpec((1, H), lambda i, k: (0, 0)),        # bo (constant)
            ],
            out_specs=pl.BlockSpec((tm, H), lambda i, k: (i, 0)),
            scratch_shapes=[pltpu.VMEM((tm, H), jnp.float32)],
        ),
        compiler_params=pltpu.CompilerParams(
            dimension_semantics=("parallel", "arbitrary"),
            vmem_limit_bytes=budget,
        ),
        cost_estimate=cost,
    )(x2d, packed.whg, packed.bhg, packed.wo, packed.bo)

    return out2d[:M].reshape(B, S, H)


def mlp_forward(hidden_states, w_h, b_h, w_g, b_g, w_o, b_o, *,
                mxu_dtype=jnp.bfloat16, ti=None):
    """One-off convenience path. For repeated calls, pack once with pack_mlp_params
    and call mlp_forward_packed (the weight repacking dominates HBM traffic otherwise)."""
    packed, ti = pack_mlp_params(w_h, b_h, w_g, b_g, w_o, b_o,
                                 mxu_dtype=mxu_dtype, ti=ti)
    return mlp_forward_packed(hidden_states, packed, ti=ti)


# ---------------------------------------------------------------------------
# Reference + demo
# ---------------------------------------------------------------------------
def _init_linear(key, out_features, in_features, dtype=jnp.float32):
    # Deterministic init mimicking torch.nn.Linear default (uniform +/- 1/sqrt(fan_in)).
    kw, kb = jax.random.split(key)
    bound = 1.0 / (in_features ** 0.5)
    w = jax.random.uniform(kw, (out_features, in_features), dtype, -bound, bound)
    b = jax.random.uniform(kb, (out_features,), dtype, -bound, bound)
    return w, b


def _reference(hidden_states, w_h, b_h, w_g, b_g, w_o, b_o):
    h = jax.nn.gelu(hidden_states @ w_h.T + b_h, approximate=False)
    g = hidden_states @ w_g.T + b_g
    return (h * g) @ w_o.T + b_o


if __name__ == "__main__":
    hidden_size, intermediate_size = 128, 256

    key = jax.random.PRNGKey(0)
    k_x, k_h, k_g, k_o, k_x2 = jax.random.split(key, 5)

    w_h, b_h = _init_linear(k_h, intermediate_size, hidden_size)
    w_g, b_g = _init_linear(k_g, intermediate_size, hidden_size)
    w_o, b_o = _init_linear(k_o, hidden_size, intermediate_size)

    # Pack the weights ONCE (hoisted out of the per-call forward path).
    packed_bf16, ti_bf16 = pack_mlp_params(w_h, b_h, w_g, b_g, w_o, b_o)              # default: bf16 MXU operands
    packed_f32, ti_f32 = pack_mlp_params(w_h, b_h, w_g, b_g, w_o, b_o,
                                         mxu_dtype=jnp.float32)                       # exact-precision path

    # 1) Small config consistent with the module: batch=2, seq=8, H=128, I=256 (f32 exact).
    x = jax.random.normal(k_x, (2, 8, hidden_size), jnp.float32)
    ref = _reference(x, w_h, b_h, w_g, b_g, w_o, b_o)
    out = jax.block_until_ready(mlp_forward_packed(x, packed_f32, ti=ti_f32))
    assert out.shape == x.shape
    assert jnp.allclose(out, ref, atol=2e-4, rtol=2e-4), "mismatch vs reference (f32, small)"

    # 2) Default bf16-MXU path on the same input (f32 accumulation / elementwise).
    out_b = jax.block_until_ready(mlp_forward_packed(x, packed_bf16, ti=ti_bf16))
    assert bool(jnp.all(jnp.isfinite(out_b)))
    assert jnp.allclose(out_b, ref, atol=5e-2, rtol=5e-2), "bf16 MXU path diverged (small)"

    # 3) Larger token count: multi-tile M grid (gm >= 2) + M remainder padding.
    x2 = jax.random.normal(k_x2, (2, 201, hidden_size), jnp.float32)
    ref2 = _reference(x2, w_h, b_h, w_g, b_g, w_o, b_o)
    out2 = jax.block_until_ready(mlp_forward_packed(x2, packed_bf16, ti=ti_bf16))
    assert out2.shape == x2.shape
    assert jnp.allclose(out2, ref2, atol=5e-2, rtol=5e-2), "mismatch vs reference (bf16, multi-tile M)"

    out2f = jax.block_until_ready(mlp_forward_packed(x2, packed_f32, ti=ti_f32))
    assert jnp.allclose(out2f, ref2, atol=2e-4, rtol=2e-4), "mismatch vs reference (f32, multi-tile M)"

    # 4) Multi-step reduction over the intermediate dim (gk > 1) with I padding: force ti=192.
    packed_k, ti_k = pack_mlp_params(w_h, b_h, w_g, b_g, w_o, b_o,
                                     mxu_dtype=jnp.float32, ti=192)
    out4 = jax.block_until_ready(mlp_forward_packed(x2, packed_k, ti=ti_k))
    assert jnp.allclose(out4, ref2, atol=2e-4, rtol=2e-4), "mismatch vs reference (multi-k, padded I)"

    print("KERNEL_OK")
</pallas_src>

<mosaic_0001>
module attributes {stable_mosaic.version = 11 : i64} {
  func.func @_mlp_kernel(%arg0: i32, %arg1: i32, %arg2: memref<16x128xf32, #tpu.memory_space<vmem>>, %arg3: memref<128x512xf32, #tpu.memory_space<vmem>>, %arg4: memref<1x512xf32, #tpu.memory_space<vmem>>, %arg5: memref<256x128xf32, #tpu.memory_space<vmem>>, %arg6: memref<1x128xf32, #tpu.memory_space<vmem>>, %arg7: memref<16x128xf32, #tpu.memory_space<vmem>>, %arg8: memref<16x128xf32, #tpu.memory_space<vmem>>) attributes {dimension_semantics = [#tpu.dimension_semantics<parallel>, #tpu.dimension_semantics<arbitrary>], iteration_bounds = array<i64: 1, 1>, scalar_prefetch = 0 : i64, scratch_operands = 1 : i64, tpu.core_type = #tpu.core_type<tc>, window_params = [{transform_indices = @transform_0, window_bounds = array<i64: 16, 128>}, {transform_indices = @transform_1, window_bounds = array<i64: 128, 512>}, {transform_indices = @transform_2, window_bounds = array<i64: 1, 512>}, {transform_indices = @transform_3, window_bounds = array<i64: 256, 128>}, {pipeline_mode = #tpu.pipeline_mode<synchronous>, transform_indices = @transform_4, window_bounds = array<i64: 1, 128>}, {transform_indices = @transform_5, window_bounds = array<i64: 16, 128>}]} {
    %c0_i32 = arith.constant 0 : i32
    %0 = arith.cmpi eq, %arg1, %c0_i32 : i32
    %1 = arith.extui %0 : i1 to i32
    %c0_i32_0 = arith.constant 0 : i32
    %2 = arith.cmpi ne, %1, %c0_i32_0 : i32
    scf.if %2 {
      %c0_18 = arith.constant 0 : index
      %c0_19 = arith.constant 0 : index
      %28 = vector.load %arg6[%c0_18, %c0_19] : memref<1x128xf32, #tpu.memory_space<vmem>>, vector<1x128xf32>
      %29 = vector.shape_cast %28 : vector<1x128xf32> to vector<1x128xf32>
      %30 = vector.broadcast %29 : vector<1x128xf32> to vector<16x128xf32>
      %c0_20 = arith.constant 0 : index
      %c0_21 = arith.constant 0 : index
      %31 = vector.load %arg8[%c0_20, %c0_21] : memref<16x128xf32, #tpu.memory_space<vmem>>, vector<16x128xf32>
      tpu.vector_store %arg8[%c0_20, %c0_21], %30 {strides = array<i32>} : memref<16x128xf32, #tpu.memory_space<vmem>>, vector<16x128xf32>,
    } else {
    }
    %c0 = arith.constant 0 : index
    %c0_1 = arith.constant 0 : index
    %3 = vector.load %arg2[%c0, %c0_1] : memref<16x128xf32, #tpu.memory_space<vmem>>, vector<16x128xf32>
    %c0_2 = arith.constant 0 : index
    %c0_3 = arith.constant 0 : index
    %4 = vector.load %arg3[%c0_2, %c0_3] : memref<128x512xf32, #tpu.memory_space<vmem>>, vector<128x512xf32>
    %cst = arith.constant dense<0.000000e+00> : vector<16x512xf32>
    %5 = tpu.matmul %3, %4, %cst {dimension_numbers = #tpu.dot_dimension_numbers<[1], [0], [0], [1], [0, 0, 1, 1], [], []>} : vector<16x128xf32>, vector<128x512xf32>, vector<16x512xf32> -> vector<16x512xf32>
    %c0_4 = arith.constant 0 : index
    %c0_5 = arith.constant 0 : index
    %6 = vector.load %arg4[%c0_4, %c0_5] : memref<1x512xf32, #tpu.memory_space<vmem>>, vector<1x512xf32>
    %7 = vector.broadcast %6 : vector<1x512xf32> to vector<16x512xf32>
    %8 = arith.addf %5, %7 : vector<16x512xf32>
    %9 = vector.extract_strided_slice %8 {offsets = [0, 0], sizes = [16, 256], strides = [1, 1]} : vector<16x512xf32> to vector<16x256xf32>
    %cst_6 = arith.constant 5.000000e-01 : f32
    %10 = vector.broadcast %cst_6 : f32 to vector<16x256xf32>
    %11 = arith.mulf %10, %9 : vector<16x256xf32>
    %cst_7 = arith.constant 0.707106769 : f32
    %12 = vector.broadcast %cst_7 : f32 to vector<16x256xf32>
    %13 = arith.mulf %9, %12 : vector<16x256xf32>
    %14 = math.erf %13 : vector<16x256xf32>
    %cst_8 = arith.constant 1.000000e+00 : f32
    %15 = vector.broadcast %cst_8 : f32 to vector<16x256xf32>
    %16 = arith.addf %15, %14 : vector<16x256xf32>
    %17 = arith.mulf %11, %16 : vector<16x256xf32>
    %18 = vector.extract_strided_slice %8 {offsets = [0, 256], sizes = [16, 256], strides = [1, 1]} : vector<16x512xf32> to vector<16x256xf32>
    %19 = arith.mulf %17, %18 : vector<16x256xf32>
    %c0_9 = arith.constant 0 : index
    %c0_10 = arith.constant 0 : index
    %20 = vector.load %arg8[%c0_9, %c0_10] : memref<16x128xf32, #tpu.memory_space<vmem>>, vector<16x128xf32>
    %c0_11 = arith.constant 0 : index
    %c0_12 = arith.constant 0 : index
    %21 = vector.load %arg5[%c0_11, %c0_12] : memref<256x128xf32, #tpu.memory_space<vmem>>, vector<256x128xf32>
    %cst_13 = arith.constant dense<0.000000e+00> : vector<16x128xf32>
    %22 = tpu.matmul %19, %21, %cst_13 {dimension_numbers = #tpu.dot_dimension_numbers<[1], [0], [0], [1], [0, 0, 1, 1], [], []>} : vector<16x256xf32>, vector<256x128xf32>, vector<16x128xf32> -> vector<16x128xf32>
    %23 = arith.addf %20, %22 : vector<16x128xf32>
    %c0_14 = arith.constant 0 : index
    %c0_15 = arith.constant 0 : index
    %24 = vector.load %arg8[%c0_14, %c0_15] : memref<16x128xf32, #tpu.memory_space<vmem>>, vector<16x128xf32>
    tpu.vector_store %arg8[%c0_14, %c0_15], %23 {strides = array<i32>} : memref<16x128xf32, #tpu.memory_space<vmem>>, vector<16x128xf32>,
    %c0_i32_16 = arith.constant 0 : i32
    %25 = arith.cmpi eq, %arg1, %c0_i32_16 : i32
    %26 = arith.extui %25 : i1 to i32
    %c0_i32_17 = arith.constant 0 : i32
    %27 = arith.cmpi ne, %26, %c0_i32_17 : i32
    scf.if %27 {
      %c0_18 = arith.constant 0 : index
      %c0_19 = arith.constant 0 : index
      %28 = vector.load %arg8[%c0_18, %c0_19] : memref<16x128xf32, #tpu.memory_space<vmem>>, vector<16x128xf32>
      %c0_20 = arith.constant 0 : index
      %c0_21 = arith.constant 0 : index
      %29 = vector.load %arg7[%c0_20, %c0_21] : memref<16x128xf32, #tpu.memory_space<vmem>>, vector<16x128xf32>
      tpu.vector_store %arg7[%c0_20, %c0_21], %28 {strides = array<i32>} : memref<16x128xf32, #tpu.memory_space<vmem>>, vector<16x128xf32>,
    } else {
    }
    return
  }
  func.func @transform_0(%arg0: i32, %arg1: i32) -> (i32, i32) {
    %c0_i32 = arith.constant 0 : i32
    %c0_i32_0 = arith.constant 0 : i32
    return %arg0, %c0_i32 : i32, i32
  }
  func.func @transform_1(%arg0: i32, %arg1: i32) -> (i32, i32) {
    %c0_i32 = arith.constant 0 : i32
    %c0_i32_0 = arith.constant 0 : i32
    return %c0_i32, %arg1 : i32, i32
  }
  func.func @transform_2(%arg0: i32, %arg1: i32) -> (i32, i32) {
    %c0_i32 = arith.constant 0 : i32
    %c0_i32_0 = arith.constant 0 : i32
    return %c0_i32, %arg1 : i32, i32
  }
  func.func @transform_3(%arg0: i32, %arg1: i32) -> (i32, i32) {
    %c0_i32 = arith.constant 0 : i32
    %c0_i32_0 = arith.constant 0 : i32
    return %arg1, %c0_i32 : i32, i32
  }
  func.func @transform_4(%arg0: i32, %arg1: i32) -> (i32, i32) {
    %c0_i32 = arith.constant 0 : i32
    %c0_i32_0 = arith.constant 0 : i32
    %c0_i32_1 = arith.constant 0 : i32
    return %c0_i32, %c0_i32_0 : i32, i32
  }
  func.func @transform_5(%arg0: i32, %arg1: i32) -> (i32, i32) {
    %c0_i32 = arith.constant 0 : i32
    %c0_i32_0 = arith.constant 0 : i32
    return %arg0, %c0_i32 : i32, i32
  }
}

</mosaic_0001>

<bundles_post_ra>
// kernel: mlp_forward_packed.1
= control target key start
LH: loop header
LB: loop body
LE: loop exit
PB: predicated region body
PF: predicated region fallthrough
CT: control target
= control target key end

     0   :  { %10 = vsyncpa [#allocation4], 0  ;;  %s939_s0 = inlined_call_operand.hbm [shape: f32[16,128], index: 0, kind: input, shape index: {}]   ;;  %s940_s1 = inlined_call_operand.hbm [shape: f32[128,512], index: 1, kind: input, shape index: {}]   ;;  %s941_s2 = inlined_call_operand.hbm [shape: f32[1,512], index: 2, kind: input, shape index: {}]   ;;  %s942_s3 = inlined_call_operand.hbm [shape: f32[256,128], index: 3, kind: input, shape index: {}]   ;;  %s943_s4 = inlined_call_operand.hbm [shape: f32[1,128], index: 4, kind: input, shape index: {}]   ;;  %s944_s5 = inlined_call_operand.hbm [shape: f32[16,128], index: 5, kind: output, shape index: {}]  }
   0x1   :  { %11 = vsyncpa [#allocation7], 0 }
   0x2   :  { %12 = vsyncpa [#allocation10], 0 }
   0x3   :  { %13 = vsyncpa [#allocation5], 0  ;;  %s813_s18 = smov [#allocation6]   ;;  %s673_s22 = scalar_lea.hbm %s940_s1, 8192 }
   0x4   :  { %s31_s19 = sshll.u32 %s813_s18, 4  ;;  %p674_p0 = scmp.ne.s32.totalorder %s940_s1, %s673_s22  ;;  %s32_s19 = int_to_ptr.vmem [resolvable:$true] %s31_s19 }
   0x5   :  { %p677_p1 = scmp.lt.u32.totalorder %s673_s22, %s940_s1 }
   0x7   :  { %p679_p2 = pnand %p677_p1, %p674_p0 }
   0x9   :  { %682 = shalt.err (!%p679_p2)
}
   0xa   :  { %s683_s27 = scalar_lea.vmem %s32_s19, 8192  ;;  %p688_p4 = scmp.lt.s32.totalorder %s32_s19, %s32_s19 }
   0xb   :  { %p684_p3 = scmp.ne.s32.totalorder %s32_s19, %s683_s27  ;;  %p689_p5 = scmp.lt.s32.totalorder %s683_s27, %s683_s27 }
   0xd   :  { %p690_p6 = por %p689_p5, %p688_p4 }
   0xf   :  { %p691_p7 = pnand %p690_p6, %p684_p3 }
  0x11   :  { %694 = shalt.err (!%p691_p7)
}
  0x12   :  { %s814_s28 = smov 512   ;;  %s815_s29 = smov 32  }
  0x13   :  { %37 = dma.hbm_to_vmem [thread:$0]  %s940_s1, 8192, %s32_s19, [#allocation7], %s814_s28, %s814_s28, %s815_s29  }
  0x14   :  { %s816_s7 = smov [#allocation9]   ;;  %s817_s9 = smov [#allocation3]  }
  0x15   :  { %s53_s8 = sshll.u32 %s816_s7, 4  ;;  %s19_s10 = sshll.u32 %s817_s9, 4  ;;  %s54_s8 = int_to_ptr.vmem [resolvable:$true] %s53_s8  ;;  %s20_s10 = int_to_ptr.vmem [resolvable:$true] %s19_s10 }
  0x16   :  { %s695_s13 = scalar_lea.hbm %s942_s3, 4096 }
  0x17   :  { %p696_p8 = scmp.ne.s32.totalorder %s942_s3, %s695_s13  ;;  %p699_p9 = scmp.lt.u32.totalorder %s695_s13, %s942_s3 }
  0x19   :  { %p701_p10 = pnand %p699_p9, %p696_p8 }
  0x1b   :  { %704 = shalt.err (!%p701_p10)
}
  0x1c   :  { %s705_s1 = scalar_lea.vmem %s54_s8, 4096  ;;  %p710_p12 = scmp.lt.s32.totalorder %s54_s8, %s54_s8 }
  0x1d   :  { %p706_p11 = scmp.ne.s32.totalorder %s54_s8, %s705_s1  ;;  %p711_p13 = scmp.lt.s32.totalorder %s705_s1, %s705_s1 }
  0x1f   :  { %p712_p0 = por %p711_p13, %p710_p12 }
  0x21   :  { %p713_p1 = pnand %p712_p0, %p706_p11 }
  0x23   :  { %716 = shalt.err (!%p713_p1)
}
  0x24   :  { %s818_s18 = smov 128   ;;  %s819_s19 = smov 8  }
  0x25   :  { %59 = dma.hbm_to_vmem [thread:$0]  %s942_s3, 4096, %s54_s8, [#allocation10], %s818_s18, %s818_s18, %s819_s19  }
  0x26   :  { %s717_s24 = scalar_lea.hbm %s939_s0, 256 }
  0x27   :  { %p718_p2 = scmp.ne.s32.totalorder %s939_s0, %s717_s24  ;;  %p721_p3 = scmp.lt.u32.totalorder %s717_s24, %s939_s0 }
  0x29   :  { %p723_p4 = pnand %p721_p3, %p718_p2 }
  0x2b   :  { %726 = shalt.err (!%p723_p4)
}
  0x2c   :  { %s727_s29 = scalar_lea.vmem %s20_s10, 256  ;;  %p732_p6 = scmp.lt.s32.totalorder %s20_s10, %s20_s10 }
  0x2d   :  { %p728_p5 = scmp.ne.s32.totalorder %s20_s10, %s727_s29  ;;  %p733_p7 = scmp.lt.s32.totalorder %s727_s29, %s727_s29 }
  0x2f   :  { %p734_p8 = por %p733_p7, %p732_p6 }
  0x31   :  { %p735_p9 = pnand %p734_p8, %p728_p5 }
  0x33   :  { %738 = shalt.err (!%p735_p9)
}
  0x34   :  { %25 = dma.hbm_to_vmem [thread:$0]  %s939_s0, 256, %s20_s10, [#allocation4], %s818_s18, %s818_s18, %s819_s19  }
  0x35   :  { %s820_s6 = smov [#allocation8]   ;;  %s821_s8 = smov [#allocation11]  }
  0x36   :  { %s44_s7 = sshll.u32 %s820_s6, 4  ;;  %s66_s9 = sshll.u32 %s821_s8, 4  ;;  %s45_s7 = int_to_ptr.vmem [resolvable:$true] %s44_s7  ;;  %s67_s9 = int_to_ptr.vmem [resolvable:$true] %s66_s9 }
  0x37   :  { %s739_s13 = scalar_lea.hbm %s941_s2, 64 }
  0x38   :  { %p740_p10 = scmp.ne.s32.totalorder %s941_s2, %s739_s13  ;;  %p743_p11 = scmp.lt.u32.totalorder %s739_s13, %s941_s2 }
  0x3a   :  { %p745_p12 = pnand %p743_p11, %p740_p10 }
  0x3c   :  { %748 = shalt.err (!%p745_p12)
}
  0x3d   :  { %s749_s0 = scalar_lea.vmem %s45_s7, 64  ;;  %p754_p0 = scmp.lt.s32.totalorder %s45_s7, %s45_s7 }
  0x3e   :  { %p750_p13 = scmp.ne.s32.totalorder %s45_s7, %s749_s0  ;;  %p755_p1 = scmp.lt.s32.totalorder %s749_s0, %s749_s0 }
  0x40   :  { %p756_p2 = por %p755_p1, %p754_p0 }
  0x42   :  { %p757_p3 = pnand %p756_p2, %p750_p13 }
  0x44   :  { %760 = shalt.err (!%p757_p3)
}
  0x45   :  { %47 = dma.hbm_to_vmem [thread:$0]  %s941_s2, 64, %s45_s7, [#allocation7]  }
  0x46   :  { %s761_s22 = scalar_lea.hbm %s943_s4, 16 }
  0x47   :  { %p762_p4 = scmp.ne.s32.totalorder %s943_s4, %s761_s22  ;;  %p765_p5 = scmp.lt.u32.totalorder %s761_s22, %s943_s4 }
  0x49   :  { %p767_p6 = pnand %p765_p5, %p762_p4 }
  0x4b   :  { %770 = shalt.err (!%p767_p6)
}
  0x4c   :  { %s771_s27 = scalar_lea.vmem %s67_s9, 16  ;;  %s775_s28 = scalar_lea.vmem %s67_s9, 32 }
  0x4d   :  { %p772_p7 = scmp.ne.s32.totalorder %s67_s9, %s771_s27  ;;  %p776_p8 = scmp.lt.s32.totalorder %s67_s9, %s67_s9 }
  0x4e   :  { %p777_p9 = scmp.lt.s32.totalorder %s775_s28, %s771_s27 }
  0x50   :  { %p778_p10 = por %p777_p9, %p776_p8 }
  0x52   :  { %p779_p11 = pnand %p778_p10, %p772_p7 }
  0x54   :  { %782 = shalt.err (!%p779_p11)
}
  0x55   :  { %69 = dma.hbm_to_vmem [thread:$0]  %s943_s4, 16, %s67_s9, [#allocation10]  }
  0x56   :  { %805 = dma.done.wait [#allocation4], 256  }
  0x57   :  { %806 = vsyncadd [#allocation4], 4294967040 }
  0x58   :  { %807 = dma.done.wait [#allocation7], 8256  }
  0x59   :  { %808 = vsyncadd [#allocation7], 4294959040 }
  0x5a   :  { %809 = dma.done.wait [#allocation10], 4112  }
  0x5b   :  { %810 = vsyncadd [#allocation10], 4294963184  ;;  %v822_v0 = vmov 0.0   ;;  %v101_v1 = vld [vmem:[#allocation6 + $0x8] sm:$0xff]  ;;  %v100_v3 = vld [vmem:[#allocation6] sm:$0xff]  ;;  %s823_s4 = smov [#allocation12]  }
  0x5c   :  { %250 = vmatprep.mubr.f32.mxu0 %v822_v0  ;;  %327 = vmatprep.mubr.f32.mxu1 %v822_v0  ;;  %v105_v2 = vld [vmem:[#allocation6 + $0x28] sm:$0xff]  ;;  %v104_v5 = vld [vmem:[#allocation6 + $0x20] sm:$0xff]  ;;  %v103_v20 = vld [vmem:[#allocation6 + $0x18] sm:$0xff]  ;;  %s489_s3 = sshll.u32 %s823_s4, 4  ;;  %s490_s3 = int_to_ptr.vmem [resolvable:$true] %s489_s3 }
  0x5d   :  { %v542_v4 = vpack.c.bf16 %v105_v2, %v101_v1  ;;  %v109_v6 = vld [vmem:[#allocation6 + $0x48] sm:$0xff]  ;;  %v544_v8 = vpack.c.bf16 %v104_v5, %v100_v3  ;;  %v108_v10 = vld [vmem:[#allocation6 + $0x40] sm:$0xff]  ;;  %v107_v21 = vld [vmem:[#allocation6 + $0x38] sm:$0xff]  ;;  %s783_s30 = scalar_lea.vmem %s490_s3, 256  ;;  %p788_p13 = scmp.lt.s32.totalorder %s490_s3, %s490_s3 }
  0x5e   :  { %v113_v7 = vld [vmem:[#allocation6 + $0x68] sm:$0xff]  ;;  %v112_v11 = vld [vmem:[#allocation6 + $0x60] sm:$0xff]  ;;  %v574_v22 = vpack.c.bf16 %v107_v21, %v103_v20  ;;  %v102_v23 = vld [vmem:[#allocation6 + $0x10] sm:$0xff]  ;;  %p784_p12 = scmp.ne.s32.totalorder %s490_s3, %s783_s30  ;;  %p789_p0 = scmp.lt.s32.totalorder %s783_s30, %s783_s30 }
  0x5f   :  { %v546_v9 = vpack.c.bf16 %v113_v7, %v109_v6  ;;  %v117_v12 = vld [vmem:[#allocation6 + $0x88] sm:$0xff]  ;;  %543 = vmatprep.subr.bf16.mxu0 %v542_v4  ;;  %v548_v14 = vpack.c.bf16 %v112_v11, %v108_v10  ;;  %v116_v16 = vld [vmem:[#allocation6 + $0x80] sm:$0xff]  ;;  %v106_v24 = vld [vmem:[#allocation6 + $0x30] sm:$0xff] }
  0x60   :  { %v121_v13 = vld [vmem:[#allocation6 + $0xa8] sm:$0xff]  ;;  %545 = vmatpush1.bf16.msra.mxu0 %v544_v8  ;;  %v120_v17 = vld [vmem:[#allocation6 + $0xa0] sm:$0xff]  ;;  %v576_v27 = vpack.c.bf16 %v106_v24, %v102_v23  ;;  %v111_v28 = vld [vmem:[#allocation6 + $0x58] sm:$0xff]  ;;  %575 = vmatprep.subr.bf16.mxu1 %v574_v22  ;;  %p790_p1 = por %p789_p0, %p788_p13 }
  0x61   :  { %547 = vmatprep.subr.bf16.mxu0 %v546_v9  ;;  %v550_v15 = vpack.c.bf16 %v121_v13, %v117_v12  ;;  %v125_v18 = vld [vmem:[#allocation6 + $0xc8] sm:$0xff]  ;;  %v552_v25 = vpack.c.bf16 %v120_v17, %v116_v16  ;;  %v124_v26 = vld [vmem:[#allocation6 + $0xc0] sm:$0xff]  ;;  %v115_v32 = vld [vmem:[#allocation6 + $0x78] sm:$0xff] }
  0x62   :  { %v129_v19 = vld [vmem:[#allocation6 + $0xe8] sm:$0xff]  ;;  %v128_v30 = vld [vmem:[#allocation6 + $0xe0] sm:$0xff]  ;;  %577 = vmatpush1.bf16.msra.mxu1 %v576_v27  ;;  %v578_v34 = vpack.c.bf16 %v115_v32, %v111_v28  ;;  %v110_v35 = vld [vmem:[#allocation6 + $0x50] sm:$0xff]  ;;  %p791_p2 = pnand %p790_p1, %p784_p12 }
  0x63   :  { %v554_v29 = vpack.c.bf16 %v129_v19, %v125_v18  ;;  %v133_v31 = vld [vmem:[#allocation6 + $0x108] sm:$0xff]  ;;  %v114_v36 = vld [vmem:[#allocation6 + $0x70] sm:$0xff]  ;;  %v119_v38 = vld [vmem:[#allocation6 + $0x98] sm:$0xff]  ;;  %v556_v40 = vpack.c.bf16 %v128_v30, %v124_v26 }
  0x64   :  { %549 = vmatpush1.bf16.msra.mxu0 %v548_v14  ;;  %v137_v33 = vld [vmem:[#allocation6 + $0x128] sm:$0xff]  ;;  %v580_v37 = vpack.c.bf16 %v114_v36, %v110_v35  ;;  %v123_v39 = vld [vmem:[#allocation6 + $0xb8] sm:$0xff]  ;;  %v132_v41 = vld [vmem:[#allocation6 + $0x100] sm:$0xff]  ;;  %579 = vmatprep.subr.bf16.mxu1 %v578_v34 }
  0x65   :  { %551 = vmatprep.subr.bf16.mxu0 %v550_v15  ;;  %v582_v42 = vpack.c.bf16 %v123_v39, %v119_v38  ;;  %v118_v43 = vld [vmem:[#allocation6 + $0x90] sm:$0xff]  ;;  %v558_v44 = vpack.c.bf16 %v137_v33, %v133_v31  ;;  %v136_v45 = vld [vmem:[#allocation6 + $0x120] sm:$0xff]  ;;  %v141_v46 = vld [vmem:[#allocation6 + $0x148] sm:$0xff] }
  0x66   :  { %v122_v47 = vld [vmem:[#allocation6 + $0xb0] sm:$0xff]  ;;  %v145_v48 = vld [vmem:[#allocation6 + $0x168] sm:$0xff]  ;;  %581 = vmatpush1.bf16.msra.mxu1 %v580_v37  ;;  %v127_v50 = vld [vmem:[#allocation6 + $0xd8] sm:$0xff]  ;;  %v560_v55 = vpack.c.bf16 %v136_v45, %v132_v41 }
  0x67   :  { %v584_v49 = vpack.c.bf16 %v122_v47, %v118_v43  ;;  %v131_v51 = vld [vmem:[#allocation6 + $0xf8] sm:$0xff]  ;;  %583 = vmatprep.subr.bf16.mxu1 %v582_v42  ;;  %v126_v53 = vld [vmem:[#allocation6 + $0xd0] sm:$0xff]  ;;  %v562_v58 = vpack.c.bf16 %v145_v48, %v141_v46  ;;  %v140_v59 = vld [vmem:[#allocation6 + $0x140] sm:$0xff] }
  0x68   :  { %553 = vmatpush1.bf16.msra.mxu0 %v552_v25  ;;  %v586_v52 = vpack.c.bf16 %v131_v51, %v127_v50  ;;  %v130_v54 = vld [vmem:[#allocation6 + $0xf0] sm:$0xff]  ;;  %v135_v56 = vld [vmem:[#allocation6 + $0x118] sm:$0xff]  ;;  %v144_v60 = vld [vmem:[#allocation6 + $0x160] sm:$0xff] }
  0x69   :  { %555 = vmatprep.subr.bf16.mxu0 %v554_v29  ;;  %v139_v57 = vld [vmem:[#allocation6 + $0x138] sm:$0xff]  ;;  %v149_v61 = vld [vmem:[#allocation6 + $0x188] sm:$0xff]  ;;  %v588_v63 = vpack.c.bf16 %v130_v54, %v126_v53  ;;  %v134_v2 = vld [vmem:[#allocation6 + $0x110] sm:$0xff]  ;;  %v564_v4 = vpack.c.bf16 %v144_v60, %v140_v59 }
  0x6a   :  { %v153_v62 = vld [vmem:[#allocation6 + $0x1a8] sm:$0xff]  ;;  %585 = vmatpush1.bf16.msra.mxu1 %v584_v49  ;;  %v590_v1 = vpack.c.bf16 %v139_v57, %v135_v56  ;;  %v138_v3 = vld [vmem:[#allocation6 + $0x130] sm:$0xff]  ;;  %v143_v5 = vld [vmem:[#allocation6 + $0x158] sm:$0xff] }
  0x6b   :  { %587 = vmatprep.subr.bf16.mxu1 %v586_v52  ;;  %v147_v6 = vld [vmem:[#allocation6 + $0x178] sm:$0xff]  ;;  %v566_v7 = vpack.c.bf16 %v153_v62, %v149_v61  ;;  %v148_v8 = vld [vmem:[#allocation6 + $0x180] sm:$0xff]  ;;  %v157_v10 = vld [vmem:[#allocation6 + $0x1c8] sm:$0xff]  ;;  %v592_v12 = vpack.c.bf16 %v138_v3, %v134_v2 }
  0x6c   :  { %557 = vmatpush1.bf16.msra.mxu0 %v556_v40  ;;  %v152_v9 = vld [vmem:[#allocation6 + $0x1a0] sm:$0xff]  ;;  %v161_v11 = vld [vmem:[#allocation6 + $0x1e8] sm:$0xff]  ;;  %v594_v13 = vpack.c.bf16 %v147_v6, %v143_v5  ;;  %v142_v14 = vld [vmem:[#allocation6 + $0x150] sm:$0xff] }
  0x6d   :  { %559 = vmatprep.subr.bf16.mxu0 %v558_v44  ;;  %v146_v15 = vld [vmem:[#allocation6 + $0x170] sm:$0xff]  ;;  %v568_v16 = vpack.c.bf16 %v152_v9, %v148_v8  ;;  %v151_v17 = vld [vmem:[#allocation6 + $0x198] sm:$0xff]  ;;  %v570_v19 = vpack.c.bf16 %v161_v11, %v157_v10  ;;  %v156_v20 = vld [vmem:[#allocation6 + $0x1c0] sm:$0xff] }
  0x6e   :  { %589 = vmatpush1.bf16.msra.mxu1 %v588_v63  ;;  %v155_v18 = vld [vmem:[#allocation6 + $0x1b8] sm:$0xff]  ;;  %v160_v21 = vld [vmem:[#allocation6 + $0x1e0] sm:$0xff]  ;;  %v596_v22 = vpack.c.bf16 %v146_v15, %v142_v14  ;;  %v383_v24 = vld [vmem:[#allocation9 + $0x88] sm:$0xff] }
  0x6f   :  { %591 = vmatprep.subr.bf16.mxu1 %v590_v1  ;;  %v382_v23 = vld [vmem:[#allocation9 + $0x80] sm:$0xff]  ;;  %v598_v25 = vpack.c.bf16 %v155_v18, %v151_v17  ;;  %v150_v26 = vld [vmem:[#allocation6 + $0x190] sm:$0xff]  ;;  %v572_v28 = vpack.c.bf16 %v160_v21, %v156_v20  ;;  %v159_v29 = vld [vmem:[#allocation6 + $0x1d8] sm:$0xff]  ;;  %v166_v20 = vlaneseq }
  0x70   :  { %561 = vmatpush1.bf16.msra.mxu0 %v560_v55  ;;  %v154_v27 = vld [vmem:[#allocation6 + $0x1b0] sm:$0xff]  ;;  %v163_v30 = vld [vmem:[#allocation6 + $0x1f8] sm:$0xff]  ;;  %v606_v31 = vpack.c.bf16 %v383_v24, %v382_v23  ;;  %v366_v32 = vld [vmem:[#allocation9] sm:$0xff] }
  0x71   :  { %563 = vmatprep.subr.bf16.mxu0 %v562_v58  ;;  %v367_v33 = vld [vmem:[#allocation9 + $0x8] sm:$0xff]  ;;  %v600_v34 = vpack.c.bf16 %v154_v27, %v150_v26  ;;  %v384_v35 = vld [vmem:[#allocation9 + $0x90] sm:$0xff]  ;;  %v385_v36 = vld [vmem:[#allocation9 + $0x98] sm:$0xff]  ;;  %v602_v37 = vpack.c.bf16 %v163_v30, %v159_v29  ;;  %v167_v21 = vshrl.u32 %v166_v20, 7 }
  0x72   :  { %593 = vmatpush1.bf16.msra.mxu1 %v592_v12  ;;  %v158_v38 = vld [vmem:[#allocation6 + $0x1d0] sm:$0xff]  ;;  %v608_v41 = vpack.c.bf16 %v367_v33, %v366_v32  ;;  %v610_v42 = vpack.c.bf16 %v385_v36, %v384_v35  ;;  %v369_v44 = vld [vmem:[#allocation9 + $0x18] sm:$0xff]  ;;  %v386_v48 = vld [vmem:[#allocation9 + $0xa0] sm:$0xff] }
  0x73   :  { %595 = vmatprep.subr.bf16.mxu1 %v594_v13  ;;  %v162_v39 = vld [vmem:[#allocation6 + $0x1f0] sm:$0xff]  ;;  %v99_v46 = vld [vmem:[#allocation3 + $0x8] sm:$0xff]  ;;  %v370_v51 = vld [vmem:[#allocation9 + $0x20] sm:$0xff]  ;;  %v172_v24 = vsub.s32 1, %v167_v21 }
  0x74   :  { %565 = vmatpush1.bf16.msra.mxu0 %v564_v4  ;;  %v98_v40 = vld [vmem:[#allocation3] sm:$0xff]  ;;  %v604_v45 = vpack.c.bf16 %v162_v39, %v158_v38  ;;  %v389_v55 = vld [vmem:[#allocation9 + $0xb8] sm:$0xff]  ;;  %v390_v59 = vld [vmem:[#allocation9 + $0xc0] sm:$0xff] }
  0x75   :  { %567 = vmatprep.subr.bf16.mxu0 %v566_v7  ;;  %v368_v43 = vld [vmem:[#allocation9 + $0x10] sm:$0xff]  ;;  %v387_v49 = vld [vmem:[#allocation9 + $0xa8] sm:$0xff]  ;;  %v373_v58 = vld [vmem:[#allocation9 + $0x38] sm:$0xff] }
  0x76   :  { %597 = vmatpush1.bf16.msra.mxu1 %v596_v22  ;;  %v612_v47 = vpack.c.bf16 %v369_v44, %v368_v43  ;;  %v614_v50 = vpack.c.bf16 %v387_v49, %v386_v48  ;;  %v371_v52 = vld [vmem:[#allocation9 + $0x28] sm:$0xff]  ;;  %v388_v54 = vld [vmem:[#allocation9 + $0xb0] sm:$0xff]  ;;  %v374_v62 = vld [vmem:[#allocation9 + $0x40] sm:$0xff]  ;;  %v168_v22 = vsub.s32 0, %v167_v21 }
  0x77   :  { %599 = vmatprep.subr.bf16.mxu1 %v598_v25  ;;  %v616_v53 = vpack.c.bf16 %v371_v52, %v370_v51  ;;  %v618_v56 = vpack.c.bf16 %v389_v55, %v388_v54  ;;  %v372_v57 = vld [vmem:[#allocation9 + $0x30] sm:$0xff]  ;;  %v391_v60 = vld [vmem:[#allocation9 + $0xc8] sm:$0xff]  ;;  %v393_v3 = vld [vmem:[#allocation9 + $0xd8] sm:$0xff] }
  0x78   :  { %569 = vmatpush1.bf16.msra.mxu0 %v568_v16  ;;  %v622_v61 = vpack.c.bf16 %v391_v60, %v390_v59  ;;  %v375_v63 = vld [vmem:[#allocation9 + $0x48] sm:$0xff]  ;;  %v392_v2 = vld [vmem:[#allocation9 + $0xd0] sm:$0xff]  ;;  %v377_v6 = vld [vmem:[#allocation9 + $0x58] sm:$0xff] }
  0x79   :  { %571 = vmatprep.subr.bf16.mxu0 %v570_v19  ;;  %v624_v1 = vpack.c.bf16 %v375_v63, %v374_v62  ;;  %v626_v4 = vpack.c.bf16 %v393_v3, %v392_v2  ;;  %v376_v5 = vld [vmem:[#allocation9 + $0x50] sm:$0xff]  ;;  %v394_v8 = vld [vmem:[#allocation9 + $0xe0] sm:$0xff]  ;;  %v395_v9 = vld [vmem:[#allocation9 + $0xe8] sm:$0xff] }
  0x7a   :  { %601 = vmatpush1.bf16.msra.mxu1 %v600_v34  ;;  %v628_v7 = vpack.c.bf16 %v377_v6, %v376_v5  ;;  %v630_v10 = vpack.c.bf16 %v395_v9, %v394_v8  ;;  %v378_v11 = vld [vmem:[#allocation9 + $0x60] sm:$0xff]  ;;  %v379_v12 = vld [vmem:[#allocation9 + $0x68] sm:$0xff]  ;;  %v396_v14 = vld [vmem:[#allocation9 + $0xf0] sm:$0xff] }
  0x7b   :  { %603 = vmatprep.subr.bf16.mxu1 %v602_v37  ;;  %v632_v13 = vpack.c.bf16 %v379_v12, %v378_v11  ;;  %v397_v15 = vld [vmem:[#allocation9 + $0xf8] sm:$0xff]  ;;  %v380_v17 = vld [vmem:[#allocation9 + $0x70] sm:$0xff]  ;;  %v503_v8 = vld [vmem:[#allocation11] ss:$0 sm:$0xff] }
  0x7c   :  { %573 = vmatpush1.bf16.msra.mxu0 %v572_v28  ;;  %v634_v16 = vpack.c.bf16 %v397_v15, %v396_v14  ;;  %v381_v18 = vld [vmem:[#allocation9 + $0x78] sm:$0xff] }
  0x7d   :  { %607 = vmatprep.subr.bf16.mxu0 %v606_v31  ;;  %v636_v19 = vpack.c.bf16 %v381_v18, %v380_v17  ;;  %v164_v23 = vld [vmem:[#allocation8] sm:$0xf] }
  0x7e   :  { %605 = vmatpush1.bf16.msra.mxu1 %v604_v45  ;;  %v169_v25 = vrot.slane %v164_v23, %v168_v22  ;;  %v173_v26 = vrot.slane %v164_v23, %v172_v24 }
  0x7f   :  { %251 = vmatmul.mubr.f32.vlgmr.msra.gmra.mrb[0].mxu0 %v98_v40  ;;  %638 = vmatprep.subr.bf16.mxu1 %v606_v31 }
  0x80   :  { %256 = vmatprep.mubr.f32.mxu0 %v822_v0  ;;  %609 = vmatpush3.bf16.msra.mxu0 %v608_v41 }
  0x81   :  { %611 = vmatprep.subr.bf16.mxu0 %v610_v42  ;;  %328 = vmatmul.mubr.f32.vlgmr.msra.gmra.mrb[0].mxu1 %v98_v40 }
  0x82   :  { %333 = vmatprep.mubr.f32.mxu1 %v822_v0  ;;  %646 = vmatpush3.bf16.msra.mxu1 %v608_v41  ;;  %v620_v0 = vpack.c.bf16 %v373_v58, %v372_v57  ;;  %v176_v41 = vsub.s32 2, %v167_v21 }
  0x83   :  { %257 = vmatmul.mubr.f32.gmra.mrb[2].mxu0 %v99_v46  ;;  %639 = vmatprep.subr.bf16.mxu1 %v610_v42  ;;  %v180_v42 = vsub.s32 3, %v167_v21 }
  0x84   :  { %613 = vmatpush3.bf16.msra.mxu0 %v612_v47  ;;  %v177_v45 = vrot.slane %v164_v23, %v176_v41 }
  0x85   :  { %334 = vmatmul.mubr.f32.gmra.mrb[2].mxu1 %v99_v46  ;;  %615 = vmatprep.subr.bf16.mxu0 %v614_v50  ;;  %v181_v46 = vrot.slane %v164_v23, %v180_v42 }
  0x86   :  { %647 = vmatpush3.bf16.msra.mxu1 %v612_v47 }
  0x87   :  { %640 = vmatprep.subr.bf16.mxu1 %v614_v50 }
  0x88   :  { %617 = vmatpush3.bf16.msra.mxu0 %v616_v53 }
  0x89   :  { %619 = vmatprep.subr.bf16.mxu0 %v618_v56 }
  0x8a   :  { %648 = vmatpush3.bf16.msra.mxu1 %v616_v53 }
  0x8b   :  { %641 = vmatprep.subr.bf16.mxu1 %v618_v56 }
  0x8c   :  { %621 = vmatpush3.bf16.msra.mxu0 %v620_v0 }
  0x8d   :  { %623 = vmatprep.subr.bf16.mxu0 %v622_v61 }
  0x8e   :  { %649 = vmatpush3.bf16.msra.mxu1 %v620_v0 }
  0x8f   :  { %642 = vmatprep.subr.bf16.mxu1 %v622_v61 }
  0x90   :  { %625 = vmatpush3.bf16.msra.mxu0 %v624_v1 }
  0x91   :  { %627 = vmatprep.subr.bf16.mxu0 %v626_v4 }
  0x92   :  { %650 = vmatpush3.bf16.msra.mxu1 %v624_v1 }
  0x93   :  { %643 = vmatprep.subr.bf16.mxu1 %v626_v4 }
  0x94   :  { %629 = vmatpush3.bf16.msra.mxu0 %v628_v7 }
  0x95   :  { %631 = vmatprep.subr.bf16.mxu0 %v630_v10 }
  0x96   :  { %651 = vmatpush3.bf16.msra.mxu1 %v628_v7 }
  0x97   :  { %644 = vmatprep.subr.bf16.mxu1 %v630_v10 }
  0x98   :  { %633 = vmatpush3.bf16.msra.mxu0 %v632_v13 }
  0x99   :  { %635 = vmatprep.subr.bf16.mxu0 %v634_v16 }
  0x9a   :  { %652 = vmatpush3.bf16.msra.mxu1 %v632_v13 }
  0x9b   :  { %645 = vmatprep.subr.bf16.mxu1 %v634_v16 }
  0x9c   :  { %637 = vmatpush3.bf16.msra.mxu0 %v636_v19 }
  0x9e   :  { %653 = vmatpush3.bf16.msra.mxu1 %v636_v19 }
 0x152   :  { %v252_v27 = vpop.f32.mrb[0].mxu0 }
 0x153   :  { %v253_v28 = vadd.f32 %v252_v27, %v169_v25  ;;  %v254_v29 = vpop.f32.mrb[1].mxu0 }
 0x154   :  { %v255_v30 = vadd.f32 %v254_v29, %v173_v26  ;;  %v329_v37 = vpop.f32.mrb[0].mxu1 }
 0x155   :  { %v344_v31 = vmul.f32 0.70710677, %v253_v28  ;;  %v331_v39 = vpop.f32.mrb[1].mxu1  ;;  %v340_v49 = vmul.f32 0.5, %v253_v28  ;;  %v330_v51 = vadd.f32 %v329_v37, %v177_v45 }
 0x156   :  { %v345_v32 = vmul.f32 0.70710677, %v255_v30  ;;  %v258_v33 = vpop.f32.mrb[2].mxu0  ;;  %v341_v52 = vmul.f32 0.5, %v255_v30  ;;  %v332_v54 = vadd.f32 %v331_v39, %v181_v46 }
 0x157   :  { %665 = verf.f32 %v344_v31  ;;  %v259_v34 = vadd.f32 %v258_v33, %v169_v25  ;;  %v260_v35 = vpop.f32.mrb[3].mxu0 }
 0x158   :  { %667 = verf.f32 %v345_v32  ;;  %v261_v36 = vadd.f32 %v260_v35, %v173_v26  ;;  %v335_v43 = vpop.f32.mrb[2].mxu1 }
 0x159   :  { %v346_v38 = vmul.f32 0.70710677, %v259_v34  ;;  %v337_v44 = vpop.f32.mrb[3].mxu1  ;;  %v342_v0 = vmul.f32 0.5, %v259_v34  ;;  %v336_v61 = vadd.f32 %v335_v43, %v177_v45 }
 0x15a   :  { %v347_v40 = vmul.f32 0.70710677, %v261_v36  ;;  %v343_v62 = vmul.f32 0.5, %v261_v36  ;;  %v338_v2 = vadd.f32 %v337_v44, %v181_v46 }
 0x15b   :  { %669 = verf.f32 %v346_v38 }
 0x15c   :  { %671 = verf.f32 %v347_v40 }
 0x161   :  { %v666_v47 = vpop.eup %665 }
 0x162   :  { %v668_v48 = vpop.eup %667  ;;  %v352_v50 = vadd.f32 1.0, %v666_v47 }
 0x163   :  { %v353_v53 = vadd.f32 1.0, %v668_v48 }
 0x164   :  { %v356_v55 = vmul.f32 %v352_v50, %v340_v49 }
 0x165   :  { %v670_v56 = vpop.eup %669  ;;  %v357_v57 = vmul.f32 %v353_v53, %v341_v52 }
 0x166   :  { %v672_v58 = vpop.eup %671  ;;  %v354_v59 = vadd.f32 1.0, %v670_v56  ;;  %v360_v60 = vmul.f32 %v356_v55, %v330_v51 }
 0x167   :  { %v355_v63 = vadd.f32 1.0, %v672_v58  ;;  %v361_v1 = vmul.f32 %v357_v57, %v332_v54 }
 0x168   :  { %v358_v3 = vmul.f32 %v354_v59, %v342_v0 }
 0x169   :  { %v359_v4 = vmul.f32 %v355_v63, %v343_v62  ;;  %462 = vmatprep.mubr.f32.mxu0 %v361_v1 }
 0x16a   :  { %v362_v5 = vmul.f32 %v358_v3, %v336_v61  ;;  %463 = vmatmul.mubr.f32.vlgmr.msra.gmra.mrb[4].mxu0 %v360_v60 }
 0x16b   :  { %v363_v6 = vmul.f32 %v359_v4, %v338_v2 }
 0x16d   :  { %467 = vmatprep.mubr.f32.mxu1 %v363_v6 }
 0x16e   :  { %468 = vmatmul.mubr.f32.vlgmr.msra.gmra.mrb[4].mxu1 %v362_v5 }
 0x23d   :  { %v536_v7 = vpop.f32.mrb[4].mxu0 }
 0x23e   :  { %v537_v9 = vpop.f32.mrb[5].mxu0 }
 0x23f   :  { %v538_v10 = vadd.f32 %v537_v9, %v536_v7 }
 0x241   :  { %v473_v11 = vadd.f32 %v538_v10, %v503_v8  ;;  %v539_v12 = vpop.f32.mrb[4].mxu1 }
 0x242   :  { %v540_v13 = vpop.f32.mrb[5].mxu1 }
 0x243   :  { %482 = vst [vmem:[#allocation12] sm:$0xff] %v473_v11  ;;  %v541_v14 = vadd.f32 %v540_v13, %v539_v12 }
 0x245   :  { %v474_v15 = vadd.f32 %v541_v14, %v503_v8 }
 0x247   :  { %483 = vst [vmem:[#allocation12 + $0x8] sm:$0xff] %v474_v15 }
 0x248   :  { %794 = shalt.err (!%p791_p2)
}
 0x249   :  { %s795_s8 = scalar_lea.hbm %s944_s5, 256 }
 0x24a   :  { %p796_p3 = scmp.ne.s32.totalorder %s944_s5, %s795_s8  ;;  %p799_p4 = scmp.lt.u32.totalorder %s795_s8, %s944_s5 }
 0x24c   :  { %p801_p5 = pnand %p799_p4, %p796_p3 }
 0x24e   :  { %804 = shalt.err (!%p801_p5)
}
 0x24f   :  { %495 = dma.vmem_to_hbm [thread:$0]  %s490_s3, 256, %s944_s5, [#allocation5], %s818_s18, %s818_s18, %s819_s19  }
 0x250   :  { %811 = dma.done.wait [#allocation5], 256  }
 0x251   :  { %812 = vsyncadd [#allocation5], 4294967040 }
 0x252   :  { %499 = vsyncpa [#allocation4], 1 }
 0x253   :  { %500 = vsyncpa [#allocation7], 1 }
 0x254   :  { %501 = vsyncpa [#allocation10], 1 }
 0x255   :  { %502 = vsyncpa [#allocation5], 1 }

</bundles_post_ra>
